<compile_context>
chip_gen: v6e
topology: v6e:2x2x1
jax: 0.10.0
libtpu: 0.0.40
codegen_flags: <defaults>
</compile_context>

<pallas_src>
import functools
import math

import numpy as np
import jax
import jax.numpy as jnp
from jax.experimental import pallas as pl
from jax.experimental.pallas import tpu as pltpu

# ----------------------------------------------------------------------------
# configuration (small synthetic SD)
# ----------------------------------------------------------------------------
SCALING_FACTOR = 0.18215
TIME_PROJ_DIM = 32
TEMB_DIM = 64
CTX_SEQ = 8          # prompt sequence length
CTX_DIM = 32         # cross-attention (text) feature dim
BLOCK_CH = (32, 64)  # UNet block_out_channels
LATENT_CH = 4

_PARALLEL_1D = pltpu.CompilerParams(dimension_semantics=("parallel",))


def pick_groups(c):
    for g in (8, 4, 2, 1):
        if c % g == 0:
            return g
    return 1


# ----------------------------------------------------------------------------
# in-kernel helpers
# ----------------------------------------------------------------------------
def _silu(x):
    return x * jax.nn.sigmoid(x)


def _gn_body(x, gamma, beta, groups, eps):
    """Centered two-pass GroupNorm over a (rows, C) f32 tile; stats stay in f32.
    One-hot group matrices are generated in-kernel (iota + compare), no DMA."""
    rows, C = x.shape
    cpg = C // groups
    ch_cg = jax.lax.broadcasted_iota(jnp.int32, (C, groups), 0)
    gr_cg = jax.lax.broadcasted_iota(jnp.int32, (C, groups), 1)
    lo = gr_cg * cpg
    oh = jnp.logical_and(ch_cg >= lo, ch_cg < lo + cpg).astype(jnp.float32)     # (C, G)
    ch_gc = jax.lax.broadcasted_iota(jnp.int32, (groups, C), 1)
    gr_gc = jax.lax.broadcasted_iota(jnp.int32, (groups, C), 0)
    lo2 = gr_gc * cpg
    oht = jnp.logical_and(ch_gc >= lo2, ch_gc < lo2 + cpg).astype(jnp.float32)  # (G, C)
    cnt = float(rows * cpg)
    s1 = jnp.dot(jnp.sum(x, axis=0, keepdims=True), oh,
                 preferred_element_type=jnp.float32)                            # (1, G)
    mean_c = jnp.dot(s1 / cnt, oht, preferred_element_type=jnp.float32)         # (1, C)
    xc = x - mean_c
    s2 = jnp.dot(jnp.sum(xc * xc, axis=0, keepdims=True), oh,
                 preferred_element_type=jnp.float32)                            # (1, G)
    inv_c = jnp.dot(jax.lax.rsqrt(s2 / cnt + eps), oht,
                    preferred_element_type=jnp.float32)                         # (1, C)
    return xc * inv_c * gamma + beta


# ----------------------------------------------------------------------------
# Pallas kernels
# ----------------------------------------------------------------------------
def _gn_act_kernel(x_ref, g_ref, b_ref, o_ref, *, groups, eps, silu):
    y = _gn_body(x_ref[0], g_ref[...], b_ref[...], groups, eps)
    if silu:
        y = _silu(y)
    o_ref[0] = y


def _conv_kernel(*refs, H, W, kh, kw, cin, cout, silu, add_mode):
    """Direct conv: accumulate kh*kw taps from the spatially padded input block.
    Epilogues: +bias, +row-broadcast (temb), +full residual, or +projected shortcut,
    optional SiLU.  MXU operands bf16, accumulation f32."""
    x_ref, w_ref, b_ref = refs[0], refs[1], refs[2]
    i = 3
    if add_mode == "row":
        ar_ref = refs[i]; i += 1
    elif add_mode == "full":
        af_ref = refs[i]; i += 1
    elif add_mode == "proj":
        xr_ref, ws_ref, wsb_ref = refs[i], refs[i + 1], refs[i + 2]; i += 3
    o_ref = refs[i]

    HW = H * W
    acc = jnp.zeros((HW, cout), jnp.float32)
    t = 0
    for dy in range(kh):
        for dx in range(kw):
            xt = x_ref[0, dy:dy + H, dx:dx + W, :]                 # (H, W, cin) f32
            xt = xt.reshape(HW, cin).astype(jnp.bfloat16)
            acc = acc + jnp.dot(xt, w_ref[t],
                                preferred_element_type=jnp.float32)
            t += 1
    y = acc + b_ref[...]
    if add_mode == "row":
        y = y + ar_ref[0]
    elif add_mode == "full":
        y = y + af_ref[0]
    elif add_mode == "proj":
        y = y + jnp.dot(xr_ref[0].astype(jnp.bfloat16), ws_ref[...],
                        preferred_element_type=jnp.float32) + wsb_ref[...]
    if silu:
        y = _silu(y)
    o_ref[0] = y


def _xattn_kernel(x_ref, ctx_ref, g_ref, b_ref, piw_ref, pib_ref,
                  wq_ref, wk_ref, wv_ref, wo_ref, wob_ref, pw_ref, pb_ref,
                  o_ref, *, groups, eps, scale):
    """Fused cross-attention block: GN -> proj_in -> q/k/v -> softmax -> out proj
    -> proj_out -> + residual, per batch element."""
    x = x_ref[0]                                                    # (HW, C) f32
    h = _gn_body(x, g_ref[...], b_ref[...], groups, eps)
    h = jnp.dot(h.astype(jnp.bfloat16), piw_ref[...],
                preferred_element_type=jnp.float32) + pib_ref[...]
    ctx = ctx_ref[0].astype(jnp.bfloat16)                           # (S, Dctx)
    q = jnp.dot(h.astype(jnp.bfloat16), wq_ref[...], preferred_element_type=jnp.float32)
    k = jnp.dot(ctx, wk_ref[...], preferred_element_type=jnp.float32)
    v = jnp.dot(ctx, wv_ref[...], preferred_element_type=jnp.float32)
    s = jax.lax.dot_general(q.astype(jnp.bfloat16), k.astype(jnp.bfloat16),
                            (((1,), (1,)), ((), ())),
                            preferred_element_type=jnp.float32) * scale        # (HW, S)
    m = jnp.max(s, axis=-1, keepdims=True)
    p = jnp.exp(s - m)
    l = jnp.sum(p, axis=-1, keepdims=True)
    p = p * pl.reciprocal(l, approx=True)
    a = jnp.dot(p.astype(jnp.bfloat16), v.astype(jnp.bfloat16),
                preferred_element_type=jnp.float32)                             # (HW, C)
    a = jnp.dot(a.astype(jnp.bfloat16), wo_ref[...],
                preferred_element_type=jnp.float32) + wob_ref[...]
    a = jnp.dot(a.astype(jnp.bfloat16), pw_ref[...],
                preferred_element_type=jnp.float32) + pb_ref[...]
    o_ref[0] = a + x


def _linear_kernel(x_ref, w_ref, b_ref, o_ref, *, pre_silu, silu):
    x = x_ref[...]
    if pre_silu:
        x = _silu(x)
    y = jnp.dot(x.astype(jnp.bfloat16), w_ref[...],
                preferred_element_type=jnp.float32) + b_ref[...]
    if silu:
        y = _silu(y)
    o_ref[...] = y


def _mlp2_kernel(x_ref, w1_ref, b1_ref, w2_ref, b2_ref, o_ref):
    h = jnp.dot(x_ref[...].astype(jnp.bfloat16), w1_ref[...],
                preferred_element_type=jnp.float32) + b1_ref[...]
    h = _silu(h)
    o_ref[...] = jnp.dot(h.astype(jnp.bfloat16), w2_ref[...],
                         preferred_element_type=jnp.float32) + b2_ref[...]


def _scale_add_noise_kernel(x_ref, n_ref, o_ref, *, sa, sb):
    # DDIM: noisy = sqrt(acp[t]) * (scale * mode) + sqrt(1 - acp[t]) * noise
    o_ref[...] = sa * x_ref[...] + sb * n_ref[...]


# ----------------------------------------------------------------------------
# wrappers
# ----------------------------------------------------------------------------
def groupnorm_act(x, gamma, beta, groups, *, eps=1e-5, silu=True):
    """GroupNorm (+ optional fused SiLU) over NHWC input, batch grid axis."""
    B, H, W, C = x.shape
    HW = H * W
    kern = functools.partial(_gn_act_kernel, groups=groups, eps=eps, silu=silu)
    out = pl.pallas_call(
        kern,
        out_shape=jax.ShapeDtypeStruct((B, HW, C), jnp.float32),
        grid=(B,),
        in_specs=[pl.BlockSpec((1, HW, C), lambda b: (b, 0, 0)),
                  pl.BlockSpec((1, C), lambda b: (0, 0)),
                  pl.BlockSpec((1, C), lambda b: (0, 0))],
        out_specs=pl.BlockSpec((1, HW, C), lambda b: (b, 0, 0)),
        compiler_params=_PARALLEL_1D,
    )(x.reshape(B, HW, C).astype(jnp.float32), gamma, beta)
    return out.reshape(B, H, W, C)


def conv_block(x, cw, *, stride=1, silu=False, add_row=None, add_full=None,
               shortcut=None, shortcut_x=None):
    """NHWC conv via in-kernel tap accumulation (no im2col), fused epilogues."""
    w, b, kh, kw = cw['w'], cw['b'], cw['kh'], cw['kw']
    B, H, W, cin = x.shape
    cout = w.shape[-1]
    pad = kh // 2
    xp = jnp.pad(x, ((0, 0), (pad, pad), (pad, pad), (0, 0))) if pad else x
    Hp, Wp = H + 2 * pad, W + 2 * pad
    HW = H * W

    args = [xp.astype(jnp.float32), w, b]
    in_specs = [pl.BlockSpec((1, Hp, Wp, cin), lambda bb: (bb, 0, 0, 0)),
                pl.BlockSpec((kh * kw, cin, cout), lambda bb: (0, 0, 0)),
                pl.BlockSpec((1, cout), lambda bb: (0, 0))]
    add_mode = None
    if add_row is not None:
        add_mode = "row"
        args.append(add_row.reshape(B, 1, cout).astype(jnp.float32))
        in_specs.append(pl.BlockSpec((1, 1, cout), lambda bb: (bb, 0, 0)))
    elif shortcut is not None:
        add_mode = "proj"
        cin_r = shortcut_x.shape[-1]
        args += [shortcut_x.reshape(B, HW, cin_r).astype(jnp.float32),
                 shortcut[0], shortcut[1]]
        in_specs += [pl.BlockSpec((1, HW, cin_r), lambda bb: (bb, 0, 0)),
                     pl.BlockSpec((cin_r, cout), lambda bb: (0, 0)),
                     pl.BlockSpec((1, cout), lambda bb: (0, 0))]
    elif add_full is not None:
        add_mode = "full"
        args.append(add_full.reshape(B, HW, cout).astype(jnp.float32))
        in_specs.append(pl.BlockSpec((1, HW, cout), lambda bb: (bb, 0, 0)))

    kern = functools.partial(_conv_kernel, H=H, W=W, kh=kh, kw=kw, cin=cin,
                             cout=cout, silu=silu, add_mode=add_mode)
    out = pl.pallas_call(
        kern,
        out_shape=jax.ShapeDtypeStruct((B, HW, cout), jnp.float32),
        grid=(B,),
        in_specs=in_specs,
        out_specs=pl.BlockSpec((1, HW, cout), lambda bb: (bb, 0, 0)),
        compiler_params=_PARALLEL_1D,
    )(*args)
    y = out.reshape(B, H, W, cout)
    if stride == 2:
        # TODO(synk): stride-2 handled by subsampling the stride-1 result; a strided
        # in-kernel tap read would avoid the 4x extra MXU work at real SD sizes.
        y = y[:, ::2, ::2, :]
    return y


def cross_attn_block(x, ctx, p):
    """Simplified Transformer2DModel, fully fused into one kernel per batch element.
    TODO(synk): self-attention, feed-forward and LayerNorms of BasicTransformerBlock omitted."""
    B, H, W, C = x.shape
    HW = H * W
    S, Dctx = ctx.shape[1], ctx.shape[2]
    kern = functools.partial(_xattn_kernel, groups=p['groups'], eps=1e-6,
                             scale=1.0 / math.sqrt(C))

    def full(shape):
        return pl.BlockSpec(shape, lambda bb: (0,) * len(shape))

    out = pl.pallas_call(
        kern,
        out_shape=jax.ShapeDtypeStruct((B, HW, C), jnp.float32),
        grid=(B,),
        in_specs=[pl.BlockSpec((1, HW, C), lambda bb: (bb, 0, 0)),
                  pl.BlockSpec((1, S, Dctx), lambda bb: (bb, 0, 0)),
                  full((1, C)), full((1, C)),
                  full((C, C)), full((1, C)),
                  full((C, C)), full((Dctx, C)), full((Dctx, C)),
                  full((C, C)), full((1, C)),
                  full((C, C)), full((1, C))],
        out_specs=pl.BlockSpec((1, HW, C), lambda bb: (bb, 0, 0)),
        compiler_params=_PARALLEL_1D,
    )(x.reshape(B, HW, C).astype(jnp.float32), ctx.astype(jnp.float32),
      p['gn'][0], p['gn'][1],
      p['proj_in'][0], p['proj_in'][1],
      p['wq'], p['wk'], p['wv'],
      p['wo'][0], p['wo'][1],
      p['proj_out'][0], p['proj_out'][1])
    return out.reshape(B, H, W, C)


def linear(x, wb, *, pre_silu=False, silu=False):
    w, b = wb
    kern = functools.partial(_linear_kernel, pre_silu=pre_silu, silu=silu)
    return pl.pallas_call(
        kern,
        out_shape=jax.ShapeDtypeStruct((x.shape[0], w.shape[1]), jnp.float32),
    )(x.astype(jnp.float32), w, b)


def resnet_block(x, emb, p, *, eps=1e-5):
    """diffusers ResnetBlock2D: GN+SiLU -> conv(+temb), GN+SiLU -> conv(+skip)."""
    h = groupnorm_act(x, p['gn1'][0], p['gn1'][1], p['groups_in'], eps=eps, silu=True)
    t_row = linear(emb, p['temb'], pre_silu=True)                     # (B, cout)
    h = conv_block(h, p['conv1'], add_row=t_row)                      # conv1 + bias + temb
    h = groupnorm_act(h, p['gn2'][0], p['gn2'][1], p['groups_out'], eps=eps, silu=True)
    if p['shortcut'] is not None:
        return conv_block(h, p['conv2'], shortcut=p['shortcut'], shortcut_x=x)
    return conv_block(h, p['conv2'], add_full=x)


def upsample2x(x, cw):
    # TODO(synk): nearest-2x repeat kept in XLA glue; folding it into the conv's read
    # pattern only pays off at real SD resolutions.
    x = jnp.repeat(jnp.repeat(x, 2, axis=1), 2, axis=2)
    return conv_block(x, cw)


def timestep_embedding(t, dim, max_period=10000.0):
    half = dim // 2
    freqs = np.exp(-np.log(max_period) * np.arange(half) / half)
    args = float(t) * freqs
    # diffusers get_timestep_embedding with flip_sin_to_cos=True -> [cos, sin]
    emb = np.concatenate([np.cos(args), np.sin(args)]).astype(np.float32)
    return jnp.asarray(emb)[None, :]


# ----------------------------------------------------------------------------
# deterministic parameter construction (weights stored bf16 for the MXU)
# ----------------------------------------------------------------------------
class ParamFactory:
    def __init__(self, seed=0):
        self.key = jax.random.PRNGKey(seed)

    def take(self):
        self.key, sub = jax.random.split(self.key)
        return sub

    def dense(self, fan_in, fan_out):
        w = (jax.random.normal(self.take(), (fan_in, fan_out), jnp.float32)
             / np.sqrt(fan_in)).astype(jnp.bfloat16)
        b = jnp.zeros((1, fan_out), jnp.float32)
        return w, b

    def conv(self, kh, kw, cin, cout):
        w = (jax.random.normal(self.take(), (kh * kw, cin, cout), jnp.float32)
             / np.sqrt(kh * kw * cin)).astype(jnp.bfloat16)
        b = jnp.zeros((1, cout), jnp.float32)
        return dict(w=w, b=b, kh=kh, kw=kw)

    def gn(self, c):
        return jnp.ones((1, c), jnp.float32), jnp.zeros((1, c), jnp.float32)


def make_resnet(pf, cin, cout, temb_dim=TEMB_DIM):
    return dict(
        gn1=pf.gn(cin),
        conv1=pf.conv(3, 3, cin, cout),
        temb=pf.dense(temb_dim, cout),
        gn2=pf.gn(cout),
        conv2=pf.conv(3, 3, cout, cout),
        shortcut=(pf.dense(cin, cout) if cin != cout else None),   # 1x1 conv as matmul
        groups_in=pick_groups(cin),
        groups_out=pick_groups(cout),
    )


def make_attn(pf, c, ctx_dim):
    return dict(
        gn=pf.gn(c),
        proj_in=pf.dense(c, c),
        wq=pf.dense(c, c)[0],
        wk=pf.dense(ctx_dim, c)[0],
        wv=pf.dense(ctx_dim, c)[0],
        wo=pf.dense(c, c),
        proj_out=pf.dense(c, c),
        groups=pick_groups(c),
    )


# ----------------------------------------------------------------------------
# SDFeaturizer (Pallas version)
# ----------------------------------------------------------------------------
class SDFeaturizerPallas:
    def __init__(self, seed=0):
        pf = ParamFactory(seed)
        c0, c1 = BLOCK_CH
        p = {}
        # synthetic text encoder
        p['text'] = dict(
            tok_emb=jax.random.normal(pf.take(), (8, CTX_DIM), jnp.float32) * 0.02,
            pos_emb=jax.random.normal(pf.take(), (CTX_SEQ, CTX_DIM), jnp.float32) * 0.02,
            proj=pf.dense(CTX_DIM, CTX_DIM))
        # simplified VAE encoder (two stride-2 convs -> 2*LATENT_CH moments)
        p['vae'] = dict(conv1=pf.conv(3, 3, 3, 16),
                        conv2=pf.conv(3, 3, 16, 2 * LATENT_CH))
        # UNet
        p['time_emb'] = dict(l1=pf.dense(TIME_PROJ_DIM, TEMB_DIM),
                             l2=pf.dense(TEMB_DIM, TEMB_DIM))
        p['conv_in'] = pf.conv(3, 3, LATENT_CH, c0)
        p['db0_res'] = make_resnet(pf, c0, c0)
        p['db0_attn'] = make_attn(pf, c0, CTX_DIM)
        p['db0_down'] = pf.conv(3, 3, c0, c0)
        p['db1_res'] = make_resnet(pf, c0, c1)
        p['mid_res_a'] = make_resnet(pf, c1, c1)
        p['mid_attn'] = make_attn(pf, c1, CTX_DIM)
        p['mid_res_b'] = make_resnet(pf, c1, c1)
        p['ub0_res0'] = make_resnet(pf, c1 + c1, c1)
        p['ub0_res1'] = make_resnet(pf, c1 + c0, c1)
        p['ub0_up'] = pf.conv(3, 3, c1, c1)
        p['ub1_res0'] = make_resnet(pf, c1 + c0, c0)
        p['ub1_attn0'] = make_attn(pf, c0, CTX_DIM)
        p['ub1_res1'] = make_resnet(pf, c0 + c0, c0)
        p['ub1_attn1'] = make_attn(pf, c0, CTX_DIM)
        self.p = p
        # DDIM scheduler (scaled_linear betas, like SD-2.1)
        betas = np.linspace(0.00085 ** 0.5, 0.012 ** 0.5, 1000, dtype=np.float64) ** 2
        self.alphas_cumprod = np.cumprod(1.0 - betas)

    # --- text encoder -------------------------------------------------------
    def encode_prompt(self, prompt):
        # TODO(synk): CLIP tokenizer + text encoder replaced by deterministic
        # token embeddings; only the projection matmul runs in Pallas.
        ids = np.zeros((CTX_SEQ,), np.int32)
        for i, ch in enumerate(str(prompt)[:CTX_SEQ]):
            ids[i] = (ord(ch) % 7) + 1
        base = self.p['text']['tok_emb'][jnp.asarray(ids)] + self.p['text']['pos_emb']
        emb = linear(base, self.p['text']['proj'])
        return emb[None, ...]                                   # (1, CTX_SEQ, CTX_DIM)

    # --- VAE encode (mode of DiagonalGaussian), NHWC internally --------------
    def vae_encode_mode(self, images_nchw):
        x = jnp.transpose(images_nchw, (0, 2, 3, 1)).astype(jnp.float32)   # NHWC
        x = conv_block(x, self.p['vae']['conv1'], stride=2, silu=True)
        moments = conv_block(x, self.p['vae']['conv2'], stride=2)
        return moments[..., :LATENT_CH]                                    # mean == mode

    # --- UNet time embedding (Linear -> SiLU -> Linear), fused ---------------
    def time_embedding(self, t, B):
        t_emb = jnp.broadcast_to(timestep_embedding(t, TIME_PROJ_DIM), (B, TIME_PROJ_DIM))
        te = self.p['time_emb']
        return pl.pallas_call(
            _mlp2_kernel,
            out_shape=jax.ShapeDtypeStruct((B, TEMB_DIM), jnp.float32),
        )(t_emb.astype(jnp.float32), te['l1'][0], te['l1'][1], te['l2'][0], te['l2'][1])

    # --- UNet forward (MyUNet2DConditionModel, returns up_ft dict) -----------
    def unet(self, sample_nhwc, t, up_ft_indices, encoder_hidden_states):
        p = self.p
        B = sample_nhwc.shape[0]
        emb = self.time_embedding(t, B)                                       # (B, 64)

        sample = conv_block(sample_nhwc, p['conv_in'])
        res_stack = [sample]

        # down block 0 (cross-attn) + downsample
        sample = resnet_block(sample, emb, p['db0_res'])
        sample = cross_attn_block(sample, encoder_hidden_states, p['db0_attn'])
        res_stack.append(sample)
        sample = conv_block(sample, p['db0_down'], stride=2)
        res_stack.append(sample)

        # down block 1 (plain, final -> no downsample)
        sample = resnet_block(sample, emb, p['db1_res'])
        res_stack.append(sample)

        # mid block: resnet -> cross-attn -> resnet
        sample = resnet_block(sample, emb, p['mid_res_a'])
        sample = cross_attn_block(sample, encoder_hidden_states, p['mid_attn'])
        sample = resnet_block(sample, emb, p['mid_res_b'])

        up_ft = {}
        max_idx = int(np.max(up_ft_indices))

        # up block 0 (plain) : 2 resnets on concatenated skips, then upsample
        if 0 <= max_idx:
            for rp in (p['ub0_res0'], p['ub0_res1']):
                skip = res_stack.pop()
                sample = resnet_block(jnp.concatenate([sample, skip], axis=-1), emb, rp)
            sample = upsample2x(sample, p['ub0_up'])
            if 0 in up_ft_indices:
                up_ft[0] = jnp.transpose(sample, (0, 3, 1, 2))               # NCHW

        # up block 1 (cross-attn, final -> no upsample)
        if 1 <= max_idx:
            skip = res_stack.pop()
            sample = resnet_block(jnp.concatenate([sample, skip], axis=-1), emb, p['ub1_res0'])
            sample = cross_attn_block(sample, encoder_hidden_states, p['ub1_attn0'])
            skip = res_stack.pop()
            sample = resnet_block(jnp.concatenate([sample, skip], axis=-1), emb, p['ub1_res1'])
            sample = cross_attn_block(sample, encoder_hidden_states, p['ub1_attn1'])
            if 1 in up_ft_indices:
                up_ft[1] = jnp.transpose(sample, (0, 3, 1, 2))               # NCHW

        return up_ft

    # --- jitted full forward (VAE -> add_noise -> UNet) -----------------------
    @functools.partial(jax.jit, static_argnums=(0, 3, 4))
    def _forward(self, images, prompt_embeds, t, up_ft_index):
        mode = self.vae_encode_mode(images)                                   # NHWC
        B, Hh, Ww, C = mode.shape
        noise = jax.random.normal(jax.random.PRNGKey(42), mode.shape, jnp.float32)
        sa = float(np.sqrt(self.alphas_cumprod[t])) * SCALING_FACTOR          # scale folded in
        sb = float(np.sqrt(1.0 - self.alphas_cumprod[t]))
        kern = functools.partial(_scale_add_noise_kernel, sa=sa, sb=sb)
        noisy = pl.pallas_call(
            kern,
            out_shape=jax.ShapeDtypeStruct((B * Hh * Ww, C), jnp.float32),
        )(mode.reshape(B * Hh * Ww, C), noise.reshape(B * Hh * Ww, C))
        noisy = noisy.reshape(B, Hh, Ww, C)
        return self.unet(noisy, t, list(up_ft_index), prompt_embeds)

    # --- SDFeaturizer.forward -------------------------------------------------
    def __call__(self, images, prompts, t=1, up_ft_index=(0, 1)):
        prompt_embeds = self.encode_prompt(prompts)
        return self._forward(images, prompt_embeds, int(t), tuple(up_ft_index))


# ----------------------------------------------------------------------------
if __name__ == "__main__":
    key = jax.random.PRNGKey(0)
    images = jax.random.normal(key, (1, 3, 64, 64), jnp.float32)   # NCHW, like PyTorch
    model = SDFeaturizerPallas(seed=0)
    up_ft = model(images, prompts="a photo of a cat", t=1, up_ft_index=(0, 1))
    for i in sorted(up_ft):
        jax.block_until_ready(up_ft[i])
    assert up_ft[0].shape == (1, BLOCK_CH[1], 16, 16), up_ft[0].shape
    assert up_ft[1].shape == (1, BLOCK_CH[0], 16, 16), up_ft[1].shape
    assert all(bool(jnp.isfinite(v).all()) for v in up_ft.values())
    print("KERNEL_OK")
</pallas_src>

<mosaic_0001>
module attributes {stable_mosaic.version = 11 : i64} {
  func.func @_linear_kernel(%arg0: memref<8x32xf32, #tpu.memory_space<vmem>>, %arg1: memref<32x32xbf16, #tpu.memory_space<vmem>>, %arg2: memref<1x32xf32, #tpu.memory_space<vmem>>, %arg3: memref<8x32xf32, #tpu.memory_space<vmem>>) attributes {dimension_semantics = [], scalar_prefetch = 0 : i64, scratch_operands = 0 : i64, tpu.core_type = #tpu.core_type<tc>} {
    %c0 = arith.constant 0 : index
    %c0_0 = arith.constant 0 : index
    %0 = vector.load %arg0[%c0, %c0_0] : memref<8x32xf32, #tpu.memory_space<vmem>>, vector<8x32xf32>
    %1 = arith.truncf %0 : vector<8x32xf32> to vector<8x32xbf16>
    %c0_1 = arith.constant 0 : index
    %c0_2 = arith.constant 0 : index
    %2 = vector.load %arg1[%c0_1, %c0_2] : memref<32x32xbf16, #tpu.memory_space<vmem>>, vector<32x32xbf16>
    %cst = arith.constant dense<0.000000e+00> : vector<8x32xf32>
    %3 = tpu.matmul %1, %2, %cst {dimension_numbers = #tpu.dot_dimension_numbers<[1], [0], [0], [1], [0, 0, 1, 1], [], []>} : vector<8x32xbf16>, vector<32x32xbf16>, vector<8x32xf32> -> vector<8x32xf32>
    %c0_3 = arith.constant 0 : index
    %c0_4 = arith.constant 0 : index
    %4 = vector.load %arg2[%c0_3, %c0_4] : memref<1x32xf32, #tpu.memory_space<vmem>>, vector<1x32xf32>
    %5 = vector.broadcast %4 : vector<1x32xf32> to vector<8x32xf32>
    %6 = arith.addf %3, %5 : vector<8x32xf32>
    %c0_5 = arith.constant 0 : index
    %c0_6 = arith.constant 0 : index
    %7 = vector.load %arg3[%c0_5, %c0_6] : memref<8x32xf32, #tpu.memory_space<vmem>>, vector<8x32xf32>
    tpu.vector_store %arg3[%c0_5, %c0_6], %6 {strides = array<i32>} : memref<8x32xf32, #tpu.memory_space<vmem>>, vector<8x32xf32>,
    return
  }
}

</mosaic_0001>

<bundles_post_ra>
// kernel: tpu_custom_call.1
= control target key start
LH: loop header
LB: loop body
LE: loop exit
PB: predicated region body
PF: predicated region fallthrough
CT: control target
= control target key end

     0   :  { %8 = vsyncpa [#allocation3], 0  ;;  %s257_s0 = inlined_call_operand.hbm [shape: f32[8,32], index: 0, kind: input, shape index: {}]   ;;  %s258_s1 = inlined_call_operand.hbm [shape: bf16[32,32], index: 1, kind: input, shape index: {}]   ;;  %s259_s2 = inlined_call_operand.vmem [shape: f32[1,32], index: 2, kind: input, shape index: {}]   ;;  %s260_s3 = inlined_call_operand.hbm [shape: f32[8,32], index: 3, kind: output, shape index: {}]  }
   0x1   :  { %9 = vsyncpa [#allocation6], 0 }
   0x2   :  { %10 = vsyncpa [#allocation4], 0  ;;  %s218_s12 = smov [#allocation2]   ;;  %s219_s14 = smov [#allocation5]  }
   0x3   :  { %s17_s13 = sshll.u32 %s218_s12, 4  ;;  %s26_s15 = sshll.u32 %s219_s14, 4  ;;  %s18_s13 = int_to_ptr.vmem [resolvable:$true] %s17_s13  ;;  %s27_s15 = int_to_ptr.vmem [resolvable:$true] %s26_s15 }
   0x4   :  { %s160_s16 = scalar_lea.vmem %s18_s13, 128  ;;  %p165_p1 = scmp.lt.s32.totalorder %s18_s13, %s18_s13 }
   0x5   :  { %p161_p0 = scmp.ne.s32.totalorder %s18_s13, %s160_s16  ;;  %p166_p2 = scmp.lt.s32.totalorder %s160_s16, %s160_s16 }
   0x7   :  { %p167_p3 = por %p166_p2, %p165_p1 }
   0x9   :  { %p168_p4 = pnand %p167_p3, %p161_p0 }
   0xb   :  { %171 = shalt.err (!%p168_p4)
}
   0xc   :  { %20 = dma.hbm_to_vmem [thread:$0]  %s257_s0, 128, %s18_s13, [#allocation3]  }
   0xd   :  { %s180_s19 = scalar_lea.vmem %s27_s15, 256  ;;  %p185_p6 = scmp.lt.s32.totalorder %s27_s15, %s27_s15 }
   0xe   :  { %p181_p5 = scmp.ne.s32.totalorder %s27_s15, %s180_s19  ;;  %p186_p7 = scmp.lt.s32.totalorder %s180_s19, %s180_s19 }
  0x10   :  { %p187_p8 = por %p186_p7, %p185_p6 }
  0x12   :  { %p188_p9 = pnand %p187_p8, %p181_p5 }
  0x14   :  { %191 = shalt.err (!%p188_p9)
}
  0x15   :  { %s220_s20 = smov 64   ;;  %s221_s21 = smov 4  }
  0x16   :  { %32 = dma.hbm_to_vmem [thread:$0]  %s258_s1, 256, %s27_s15, [#allocation6], %s220_s20, %s220_s20, %s221_s21  }
  0x17   :  { %212 = dma.done.wait [#allocation3], 128  }
  0x18   :  { %213 = vsyncadd [#allocation3], 4294967168 }
  0x19   :  { %214 = dma.done.wait [#allocation6], 256  }
  0x1a   :  { %215 = vsyncadd [#allocation6], 4294967040  ;;  %v222_v0 = vmov 0.0   ;;  %vm223_vm0 = vmmov 0   ;;  %v150_v1 = vld [vmem:[#allocation5 + $0x8] sm:$0xff]   ;;  %v151_v2 = vld [vmem:[#allocation5] sm:$0xff]  }
  0x1b   :  { %135 = vmatprep.subr.bf16.mxu0 %v222_v0  ;;  %139 = vmatprep.mubr.msk.bf16.mxu0 %vm223_vm0, %v222_v0  ;;  %v42_v3 = vld [vmem:[#allocation2] sm:$0xff]  ;;  %vm67_vm1 = vcmask 261120   ;;  %s224_s1 = smov [#allocation7]  }
  0x1c   :  { %136 = vmatpush3.bf16.msra.mxu0 %v150_v1  ;;  %v43_v4 = vpack.c.bf16 %v42_v3, %v42_v3  ;;  %v128_v5 = vld [vmem:[%s259_s2] ss:$0 sm:$0xff]  ;;  %s118_s25 = sshll.u32 %s224_s1, 4  ;;  %s119_s25 = int_to_ptr.vmem [resolvable:$true] %s118_s25 }
  0x1d   :  { %137 = vmatprep.subr.bf16.mxu0 %v222_v0  ;;  %s192_s26 = scalar_lea.vmem %s119_s25, 128  ;;  %p197_p11 = scmp.lt.s32.totalorder %s119_s25, %s119_s25 }
  0x1e   :  { %p193_p10 = scmp.ne.s32.totalorder %s119_s25, %s192_s26  ;;  %p198_p12 = scmp.lt.s32.totalorder %s192_s26, %s192_s26 }
  0x20   :  { %138 = vmatpush3.bf16.msra.mxu0 %v151_v2  ;;  %p199_p13 = por %p198_p12, %p197_p11 }
  0x22   :  { %p200_p0 = pnand %p199_p13, %p193_p10 }
  0x23   :  { %140 = vmatmul.mubr.msk.bf16.vlgmr.msra.gmra.mxu0 %vm67_vm1, %v43_v4 }
  0xe3   :  { %v105_v6 = vpop.f32.mrf.mxu0 }
  0xe4   :  { %v106_v7 = vadd.f32 %v128_v5, %v105_v6 }
  0xe5   :  { %v141_v8 = vpop.f32.mrf.mxu0 }
  0xe6   :  { %111 = vst.msk [vmem:[#allocation7] sm:$0xff] %vm67_vm1, %v106_v7 }
  0xe7   :  { %v108_v9 = vpop.f32.mrf.mxu0 }
  0xe8   :  { %203 = shalt.err (!%p200_p0)
}
  0xe9   :  { %121 = dma.vmem_to_hbm [thread:$0]  %s119_s25, 128, %s260_s3, [#allocation4]   ;;  %v142_v10 = vpop.f32.mrf.mxu0 }
  0xea   :  { %216 = dma.done.wait [#allocation4], 128  }
  0xeb   :  { %217 = vsyncadd [#allocation4], 4294967168 }
  0xec   :  { %125 = vsyncpa [#allocation3], 1 }
  0xed   :  { %126 = vsyncpa [#allocation6], 1 }
  0xee   :  { %127 = vsyncpa [#allocation4], 1 }

</bundles_post_ra>
